<compile_context>
chip_gen: v7x
topology: tpu7x:2x2x1
jax: 0.10.0
libtpu: 0.0.40
codegen_flags: <defaults>
</compile_context>

<pallas_src>
import jax
import jax.numpy as jnp
from jax.experimental import pallas as pl
from jax.experimental.pallas import tpu as pltpu

N_IN = 23      # input features (n)
M = 23         # hidden/out features (m)
B_IN = 1       # rows of `input`
B_OTHER = 30   # rows of `other`

LANE = 128     # lane-dense feature padding
B_PAD = 32     # sublane-dense row padding (multiple of 8 for f32)


def _fused_kernel(other_ref, w_ref, c_ref, out_ref):
    # Single MXU pass: (B_PAD, LANE) @ (LANE, LANE) in f32 accumulation,
    # followed by a broadcast add of the precomputed (1, LANE) row.
    acc = jnp.dot(other_ref[...], w_ref[...],
                  preferred_element_type=jnp.float32)
    out_ref[...] = (acc + c_ref[...]).astype(out_ref.dtype)


def fold_weights(params):
    """Fold the three linears (re-associated, mathematically identical):
       out = other @ W_eff + inp @ W_in + b_eff
    """
    w0, b0, w1, b1, w2, b2 = params
    w12 = w1 @ w2                      # (m, m)
    w_eff = w12 + w2                   # (m, m): coefficient of `other`
    w_in = w0 @ w12                    # (n, m): coefficient of `inp`
    b_eff = b0 @ w12 + b1 @ w2 + b2    # (1, m): constant row
    return w_eff, w_in, b_eff


def _pad2d(x, rows, cols):
    return jnp.pad(x, ((0, rows - x.shape[0]), (0, cols - x.shape[1])))


@jax.jit
def model_forward(inp, other, params):
    w_eff, w_in, b_eff = fold_weights(params)

    # Input-only chain collapsed to one (1, m) row, computed outside the
    # kernel (tiny; a (1,23) matmul inside the kernel is pure MXU waste).
    c_row = inp @ w_in + b_eff                      # (1, m)

    # Pad to lane/sublane-dense shapes so loads/stores are unmasked.
    other_p = _pad2d(other, B_PAD, LANE)            # (32, 128)
    w_p = _pad2d(w_eff, LANE, LANE)                 # (128, 128)
    c_p = _pad2d(c_row, 1, LANE)                    # (1, 128)

    vmem = pl.BlockSpec(memory_space=pltpu.MemorySpace.VMEM)
    out_p = pl.pallas_call(
        _fused_kernel,
        out_shape=jax.ShapeDtypeStruct((B_PAD, LANE), jnp.float32),
        in_specs=[vmem, vmem, vmem],
        out_specs=vmem,
    )(other_p, w_p, c_p)

    return out_p[:other.shape[0], :M]


def init_params(key):
    # Deterministic init mimicking nn.Linear's uniform(-1/sqrt(fan_in), ...)
    ks = jax.random.split(key, 6)

    def uniform(k, shape, fan_in):
        bound = 1.0 / jnp.sqrt(fan_in)
        return jax.random.uniform(k, shape, jnp.float32, -bound, bound)

    # stored as (in, out); biases kept 2-D (1, m)
    w0 = uniform(ks[0], (N_IN, M), N_IN)
    b0 = uniform(ks[1], (1, M), N_IN)
    w1 = uniform(ks[2], (M, M), M)
    b1 = uniform(ks[3], (1, M), M)
    w2 = uniform(ks[4], (M, M), M)
    b2 = uniform(ks[5], (1, M), M)
    return (w0, b0, w1, b1, w2, b2)


def reference_forward(inp, other, params):
    # Literal (unfolded) translation of the PyTorch module.
    w0, b0, w1, b1, w2, b2 = params
    x = inp @ w0 + b0
    x = x + other
    x = x @ w1 + b1
    x = x + other
    x = x @ w2 + b2
    return x


if __name__ == "__main__":
    key = jax.random.PRNGKey(0)
    k_in, k_other, k_params = jax.random.split(key, 3)

    inp = jax.random.normal(k_in, (B_IN, N_IN), jnp.float32)
    other = jax.random.normal(k_other, (B_OTHER, M), jnp.float32)
    params = init_params(k_params)

    out = jax.block_until_ready(model_forward(inp, other, params))

    ref = reference_forward(inp, other, params)
    assert out.shape == (B_OTHER, M), out.shape
    assert jnp.allclose(out, ref, atol=1e-4, rtol=1e-4), "mismatch vs reference"

    print("KERNEL_OK")
</pallas_src>

<mosaic_0001>
module attributes {stable_mosaic.version = 11 : i64} {
  func.func @_fused_kernel(%arg0: memref<32x128xf32, #tpu.memory_space<vmem>>, %arg1: memref<128x128xf32, #tpu.memory_space<vmem>>, %arg2: memref<1x128xf32, #tpu.memory_space<vmem>>, %arg3: memref<32x128xf32, #tpu.memory_space<vmem>>) attributes {dimension_semantics = [], scalar_prefetch = 0 : i64, scratch_operands = 0 : i64, tpu.core_type = #tpu.core_type<tc>} {
    %c0 = arith.constant 0 : index
    %c0_0 = arith.constant 0 : index
    %0 = vector.load %arg0[%c0, %c0_0] : memref<32x128xf32, #tpu.memory_space<vmem>>, vector<32x128xf32>
    %c0_1 = arith.constant 0 : index
    %c0_2 = arith.constant 0 : index
    %1 = vector.load %arg1[%c0_1, %c0_2] : memref<128x128xf32, #tpu.memory_space<vmem>>, vector<128x128xf32>
    %cst = arith.constant dense<0.000000e+00> : vector<32x128xf32>
    %2 = tpu.matmul %0, %1, %cst {dimension_numbers = #tpu.dot_dimension_numbers<[1], [0], [0], [1], [0, 0, 1, 1], [], []>} : vector<32x128xf32>, vector<128x128xf32>, vector<32x128xf32> -> vector<32x128xf32>
    %c0_3 = arith.constant 0 : index
    %c0_4 = arith.constant 0 : index
    %3 = vector.load %arg2[%c0_3, %c0_4] : memref<1x128xf32, #tpu.memory_space<vmem>>, vector<1x128xf32>
    %4 = vector.broadcast %3 : vector<1x128xf32> to vector<32x128xf32>
    %5 = arith.addf %2, %4 : vector<32x128xf32>
    %c0_5 = arith.constant 0 : index
    %c0_6 = arith.constant 0 : index
    %6 = vector.load %arg3[%c0_5, %c0_6] : memref<32x128xf32, #tpu.memory_space<vmem>>, vector<32x128xf32>
    tpu.vector_store %arg3[%c0_5, %c0_6], %5 {strides = array<i32>} : memref<32x128xf32, #tpu.memory_space<vmem>>, vector<32x128xf32>,
    return
  }
}

</mosaic_0001>

<bundles_post_ra>
// kernel: model_forward.1
= control target key start
LH: loop header
LB: loop body
LE: loop exit
PB: predicated region body
PF: predicated region fallthrough
CT: control target
= control target key end

     0   :  { %s336_s1 = inlined_call_operand.vmem [shape: f32[128,128], index: 1, kind: input, shape index: {}]   ;;  %s337_s0 = inlined_call_operand.vmem [shape: f32[32,128], index: 0, kind: input, shape index: {}]   ;;  %s338_s2 = inlined_call_operand.vmem [shape: f32[1,128], index: 2, kind: input, shape index: {}]   ;;  %s339_s3 = inlined_call_operand.vmem [shape: f32[32,128], index: 3, kind: output, shape index: {}]  }
   0x1   :  { %v18_v0 = vld [vmem:[%s336_s1] sm:$0xff]  ;;  %v19_v1 = vld [vmem:[%s336_s1 + $0x8] sm:$0xff]  ;;  %v20_v2 = vld [vmem:[%s336_s1 + $0x10] sm:$0xff] }
   0x2   :  { %v193_v3 = vpack.c.bf16 %v19_v1, %v18_v0  ;;  %v21_v4 = vld [vmem:[%s336_s1 + $0x18] sm:$0xff]  ;;  %v22_v6 = vld [vmem:[%s336_s1 + $0x20] sm:$0xff]  ;;  %v23_v7 = vld [vmem:[%s336_s1 + $0x28] sm:$0xff] }
   0x3   :  { %v197_v5 = vpack.c.bf16 %v21_v4, %v20_v2  ;;  %v201_v8 = vpack.c.bf16 %v23_v7, %v22_v6  ;;  %v14_v9 = vld [vmem:[%s337_s0] sm:$0xff]  ;;  %v16_v10 = vld [vmem:[%s337_s0 + $0x10] sm:$0xff]  ;;  %v25_v12 = vld [vmem:[%s336_s1 + $0x38] sm:$0xff] }
   0x4   :  { %194 = vmatprep.subr.bf16.mxu0 %v193_v3  ;;  %225 = vmatprep.subr.bf16.mxu1 %v193_v3  ;;  %v24_v11 = vld [vmem:[%s336_s1 + $0x30] sm:$0xff]  ;;  %v26_v14 = vld [vmem:[%s336_s1 + $0x40] sm:$0xff]  ;;  %v27_v15 = vld [vmem:[%s336_s1 + $0x48] sm:$0xff] }
   0x5   :  { %196 = vmatpush3.bf16.msra.mxu0 %v193_v3  ;;  %233 = vmatpush3.bf16.msra.mxu1 %v193_v3  ;;  %v205_v13 = vpack.c.bf16 %v25_v12, %v24_v11  ;;  %v209_v16 = vpack.c.bf16 %v27_v15, %v26_v14  ;;  %v28_v17 = vld [vmem:[%s336_s1 + $0x50] sm:$0xff]  ;;  %v29_v18 = vld [vmem:[%s336_s1 + $0x58] sm:$0xff]  ;;  %v30_v20 = vld [vmem:[%s336_s1 + $0x60] sm:$0xff] }
   0x6   :  { %198 = vmatprep.subr.bf16.mxu0 %v197_v5  ;;  %226 = vmatprep.subr.bf16.mxu1 %v197_v5  ;;  %v213_v19 = vpack.c.bf16 %v29_v18, %v28_v17  ;;  %v31_v21 = vld [vmem:[%s336_s1 + $0x68] sm:$0xff]  ;;  %v32_v23 = vld [vmem:[%s336_s1 + $0x70] sm:$0xff]  ;;  %v33_v24 = vld [vmem:[%s336_s1 + $0x78] sm:$0xff] }
   0x7   :  { %187 = vmatprep.mubr.f32.mxu0 %v14_v9  ;;  %190 = vmatprep.mubr.f32.mxu1 %v16_v10  ;;  %v217_v22 = vpack.c.bf16 %v31_v21, %v30_v20  ;;  %v221_v25 = vpack.c.bf16 %v33_v24, %v32_v23  ;;  %v15_v26 = vld [vmem:[%s337_s0 + $0x8] sm:$0xff]  ;;  %v17_v27 = vld [vmem:[%s337_s0 + $0x18] sm:$0xff]  ;;  %v134_v28 = vld [vmem:[%s338_s2] ss:$0 sm:$0xff] }
   0x9   :  { %200 = vmatpush3.bf16.msra.mxu0 %v197_v5  ;;  %234 = vmatpush3.bf16.msra.mxu1 %v197_v5 }
   0xa   :  { %202 = vmatprep.subr.bf16.mxu0 %v201_v8  ;;  %227 = vmatprep.subr.bf16.mxu1 %v201_v8 }
   0xd   :  { %204 = vmatpush3.bf16.msra.mxu0 %v201_v8  ;;  %235 = vmatpush3.bf16.msra.mxu1 %v201_v8 }
   0xe   :  { %206 = vmatprep.subr.bf16.mxu0 %v205_v13  ;;  %228 = vmatprep.subr.bf16.mxu1 %v205_v13 }
  0x11   :  { %208 = vmatpush3.bf16.msra.mxu0 %v205_v13  ;;  %236 = vmatpush3.bf16.msra.mxu1 %v205_v13 }
  0x12   :  { %210 = vmatprep.subr.bf16.mxu0 %v209_v16  ;;  %229 = vmatprep.subr.bf16.mxu1 %v209_v16 }
  0x15   :  { %212 = vmatpush3.bf16.msra.mxu0 %v209_v16  ;;  %237 = vmatpush3.bf16.msra.mxu1 %v209_v16 }
  0x16   :  { %214 = vmatprep.subr.bf16.mxu0 %v213_v19  ;;  %230 = vmatprep.subr.bf16.mxu1 %v213_v19 }
  0x19   :  { %216 = vmatpush3.bf16.msra.mxu0 %v213_v19  ;;  %238 = vmatpush3.bf16.msra.mxu1 %v213_v19 }
  0x1a   :  { %218 = vmatprep.subr.bf16.mxu0 %v217_v22  ;;  %231 = vmatprep.subr.bf16.mxu1 %v217_v22 }
  0x1d   :  { %220 = vmatpush3.bf16.msra.mxu0 %v217_v22  ;;  %239 = vmatpush3.bf16.msra.mxu1 %v217_v22 }
  0x1e   :  { %222 = vmatprep.subr.bf16.mxu0 %v221_v25  ;;  %232 = vmatprep.subr.bf16.mxu1 %v221_v25 }
  0x21   :  { %224 = vmatpush3.bf16.msra.mxu0 %v221_v25  ;;  %240 = vmatpush3.bf16.msra.mxu1 %v221_v25 }
  0x24   :  { %188 = vmatmul.mubr.f32.vlgmr.msra.gmra.mrb[0].mxu0 %v15_v26  ;;  %191 = vmatmul.mubr.f32.vlgmr.msra.gmra.mrb[0].mxu1 %v17_v27 }
  0xf7   :  { %v189_v29 = vpop.f32.mrb[0].mxu0  ;;  %v192_v30 = vpop.f32.mrb[0].mxu1 }
  0xf8   :  { %v113_v31 = vadd.f32 %v189_v29, %v134_v28  ;;  %v123_v32 = vadd.f32 %v192_v30, %v134_v28  ;;  %v107_v33 = vpop.f32.mrb[1].mxu0  ;;  %v117_v34 = vpop.f32.mrb[1].mxu1 }
  0xf9   :  { %v108_v35 = vadd.f32 %v134_v28, %v107_v33  ;;  %v118_v36 = vadd.f32 %v134_v28, %v117_v34 }
  0xfa   :  { %127 = vst [vmem:[%s339_s3 + $0x8] sm:$0xff] %v113_v31  ;;  %129 = vst [vmem:[%s339_s3 + $0x18] sm:$0xff] %v123_v32 }
  0xfb   :  { %126 = vst [vmem:[%s339_s3] sm:$0xff] %v108_v35  ;;  %128 = vst [vmem:[%s339_s3 + $0x10] sm:$0xff] %v118_v36 }

</bundles_post_ra>
